<compile_context>
chip_gen: v6e
topology: v6e:2x2x1
jax: 0.10.0
libtpu: 0.0.40
codegen_flags: <defaults>
</compile_context>

<pallas_src>
import math
import functools

import jax
import jax.numpy as jnp
from jax.experimental import pallas as pl
from jax.experimental.pallas import tpu as pltpu


def _new_gelu(x):
    # 0.5 * x * (1 + tanh(sqrt(2/pi) * (x + 0.044715 * x^3)))  -- matches torch new_gelu
    c = math.sqrt(2.0 / math.pi)
    return 0.5 * x * (1.0 + jnp.tanh(c * (x + 0.044715 * x * x * x)))


def _make_kernel(depth, D, H, HC):
    nchunks = H // HC

    def kernel(xa_ref, *refs):
        # refs = [w1_0, b1_0, w2_0, b2_0, ..., wf, bf, out_ref]
        out_ref = refs[-1]
        w = refs[:-1]

        h = xa_ref[...].astype(jnp.float32)                      # (TM, D) f32 residual stream
        for d in range(depth):                                   # static unroll over blocks
            w1_ref, b1_ref, w2_ref, b2_ref = w[4 * d: 4 * d + 4]
            h_bf = h.astype(jnp.bfloat16)                        # bf16 MXU operands
            acc = h
            # Chunk the hidden dim so the (TM, 4D) f32 GELU intermediate stays bounded.
            for c in range(nchunks):
                lo = c * HC
                z = jnp.dot(h_bf, w1_ref[:, lo:lo + HC],
                            preferred_element_type=jnp.float32)  # (TM, HC) f32
                z = z + b1_ref[:, lo:lo + HC]                    # bias differs per block -> inherent
                z = _new_gelu(z)                                 # f32 on VPU/EUP
                acc = acc + jnp.dot(z.astype(jnp.bfloat16),
                                    w2_ref[lo:lo + HC, :],
                                    preferred_element_type=jnp.float32)
            h = acc + b2_ref[...]                                # residual + proj bias

        # Final linear, lane-dense: (1, D) . (TM, D)^T -> (1, TM) (rows on the lane axis).
        wf_ref, bf_ref = w[-2], w[-1]
        logits = jax.lax.dot_general(
            wf_ref[...], h.astype(jnp.bfloat16),
            dimension_numbers=(((1,), (1,)), ((), ())),
            preferred_element_type=jnp.float32)                  # (1, TM)
        out_ref[...] = logits + bf_ref[...]                      # (1, TM) + (1, 1)

    return kernel


def init_params(key, in_features, depth):
    """Deterministic torch.nn.Linear-style init (uniform +/- 1/sqrt(fan_in)), f32."""
    params = []
    D, H = in_features, 4 * in_features

    def linear(key, fan_in, shape_w, shape_b):
        kw, kb = jax.random.split(key)
        bound = 1.0 / math.sqrt(fan_in)
        w = jax.random.uniform(kw, shape_w, jnp.float32, -bound, bound)
        b = jax.random.uniform(kb, shape_b, jnp.float32, -bound, bound)
        return w, b

    keys = jax.random.split(key, 2 * depth + 1)
    for d in range(depth):
        w1, b1 = linear(keys[2 * d], D, (D, H), (1, H))
        w2, b2 = linear(keys[2 * d + 1], H, (H, D), (1, D))
        params.extend([w1, b1, w2, b2])
    wf, bf = linear(keys[-1], D, (1, D), (1, 1))   # final Linear stored as row vector
    params.extend([wf, bf])
    return params


@functools.partial(jax.jit, static_argnames=("depth",))
def residual_logistic_regressor_logits(X, A, params, depth):
    B, dx = X.shape
    _, K, da = A.shape
    D = dx + da
    H = 4 * D
    rows = B * K

    # Glue (plain JAX): broadcast + concat + flatten to a (rows, D) matrix.
    # TODO(synk): could be fused into the kernel (per-batch X/A BlockSpecs) to save one
    # HBM pass of XA; at these weight-dominated sizes the win is small.
    Xr = jnp.broadcast_to(X[:, None, :], (B, K, dx))
    XA = jnp.concatenate([Xr, A], axis=-1).reshape(rows, D).astype(jnp.float32)

    # bf16 matmul weights, f32 biases (MXU bf16 fast path; f32 accumulation).
    cast = []
    for d in range(depth):
        w1, b1, w2, b2 = params[4 * d: 4 * d + 4]
        cast += [w1.astype(jnp.bfloat16), b1.astype(jnp.float32),
                 w2.astype(jnp.bfloat16), b2.astype(jnp.float32)]
    cast += [params[-2].astype(jnp.bfloat16), params[-1].astype(jnp.float32)]

    # Row tiling: single tile for small problems (block == full array, no padding needed),
    # TM=512 (multiple of 8 and 128) for large row counts.  No jnp.pad of XA: Pallas masks
    # the partial last block; garbage rows only affect their own (sliced-off) outputs.
    if rows <= 1024:
        TM, num_tiles = rows, 1
    else:
        TM = 512
        num_tiles = pl.cdiv(rows, TM)
    padded_out = num_tiles * TM

    # Hidden-dim chunk size for the in-kernel loop.
    HC = 512 if (H > 512 and H % 512 == 0) else H

    # Explicit VMEM budget with headroom, capped below the 64 MiB v7x per-core VMEM.
    weight_bytes = sum(int(p.size) * p.dtype.itemsize for p in cast)
    act_bytes = 2 * TM * D * 4 + 2 * padded_out * 4          # double-buffered XA tile + output
    work_bytes = 4 * TM * HC * 4 + 4 * TM * D * 4             # gelu intermediate / spill headroom
    vmem_limit = int(min(max(weight_bytes + act_bytes + work_bytes + (4 << 20), 8 << 20),
                         56 << 20))

    kernel = _make_kernel(depth, D, H, HC)

    # Weights: whole-array VMEM residents (no blocking -> no double buffering, no re-DMA).
    weight_specs = [pl.BlockSpec(memory_space=pltpu.MemorySpace.VMEM) for _ in cast]

    grid_spec = pltpu.PrefetchScalarGridSpec(
        num_scalar_prefetch=0,
        grid=(num_tiles,),
        in_specs=[pl.BlockSpec((TM, D), lambda i: (i, 0))] + weight_specs,
        out_specs=pl.BlockSpec((1, TM), lambda i: (0, i)),     # lane-dense output row
    )

    out = pl.pallas_call(
        kernel,
        out_shape=jax.ShapeDtypeStruct((1, padded_out), jnp.float32),
        grid_spec=grid_spec,
        compiler_params=pltpu.CompilerParams(
            dimension_semantics=("parallel",),                 # rows shard across TCs (v7x)
            vmem_limit_bytes=vmem_limit),
    )(XA, *cast)

    return out[0, :rows].reshape(B, K)


def _reference_logits(X, A, params, depth, cast_bf16):
    """Pure-JAX reference. cast_bf16=True mirrors the kernel's mixed precision."""
    B, dx = X.shape
    _, K, da = A.shape
    D = dx + da
    mm = jnp.bfloat16 if cast_bf16 else jnp.float32
    Xr = jnp.broadcast_to(X[:, None, :], (B, K, dx))
    h = jnp.concatenate([Xr, A], axis=-1).reshape(B * K, D).astype(jnp.float32)
    for d in range(depth):
        w1, b1, w2, b2 = params[4 * d: 4 * d + 4]
        z = jnp.dot(h.astype(mm), w1.astype(mm), preferred_element_type=jnp.float32) + b1
        z = _new_gelu(z)
        h = h + jnp.dot(z.astype(mm), w2.astype(mm), preferred_element_type=jnp.float32) + b2
    wf, bf = params[-2], params[-1]                       # (1, D), (1, 1)
    logits = jnp.dot(h.astype(mm), wf.astype(mm).T, preferred_element_type=jnp.float32) + bf
    return logits[:, 0].reshape(B, K)


if __name__ == "__main__":
    # Small shapes consistent with the module's forward: X: (B, dx), A: (B, K, da).
    B, K, dx, da = 2, 8, 16, 16
    depth = 2
    in_features = dx + da

    key = jax.random.PRNGKey(0)
    kx, ka, kp = jax.random.split(key, 3)
    X = jax.random.normal(kx, (B, dx), jnp.float32)
    A = jax.random.normal(ka, (B, K, da), jnp.float32)
    params = init_params(kp, in_features, depth)

    out = residual_logistic_regressor_logits(X, A, params, depth=depth)
    out = jax.block_until_ready(out)
    assert out.shape == (B, K), out.shape

    ref_bf16 = _reference_logits(X, A, params, depth, cast_bf16=True)
    ref_f32 = _reference_logits(X, A, params, depth, cast_bf16=False)
    assert jnp.allclose(out, ref_bf16, atol=2e-3, rtol=2e-3), \
        float(jnp.max(jnp.abs(out - ref_bf16)))
    assert jnp.allclose(out, ref_f32, atol=5e-2, rtol=5e-2), \
        float(jnp.max(jnp.abs(out - ref_f32)))

    print("KERNEL_OK")
</pallas_src>

<mosaic_0001>
module attributes {stable_mosaic.version = 11 : i64} {
  func.func @kernel(%arg0: i32, %arg1: memref<16x32xf32, #tpu.memory_space<vmem>>, %arg2: memref<32x128xbf16, #tpu.memory_space<vmem>>, %arg3: memref<1x128xf32, #tpu.memory_space<vmem>>, %arg4: memref<128x32xbf16, #tpu.memory_space<vmem>>, %arg5: memref<1x32xf32, #tpu.memory_space<vmem>>, %arg6: memref<32x128xbf16, #tpu.memory_space<vmem>>, %arg7: memref<1x128xf32, #tpu.memory_space<vmem>>, %arg8: memref<128x32xbf16, #tpu.memory_space<vmem>>, %arg9: memref<1x32xf32, #tpu.memory_space<vmem>>, %arg10: memref<1x32xbf16, #tpu.memory_space<vmem>>, %arg11: memref<1x1xf32, #tpu.memory_space<vmem>>, %arg12: memref<1x16xf32, #tpu.memory_space<vmem>>) attributes {dimension_semantics = [#tpu.dimension_semantics<parallel>], iteration_bounds = array<i64: 1>, scalar_prefetch = 0 : i64, scratch_operands = 0 : i64, tpu.core_type = #tpu.core_type<tc>, window_params = [{transform_indices = @transform_0, window_bounds = array<i64: 16, 32>}, {pipeline_mode = #tpu.pipeline_mode<synchronous>, transform_indices = @transform_1, window_bounds = array<i64: 32, 128>}, {pipeline_mode = #tpu.pipeline_mode<synchronous>, transform_indices = @transform_2, window_bounds = array<i64: 1, 128>}, {pipeline_mode = #tpu.pipeline_mode<synchronous>, transform_indices = @transform_3, window_bounds = array<i64: 128, 32>}, {pipeline_mode = #tpu.pipeline_mode<synchronous>, transform_indices = @transform_4, window_bounds = array<i64: 1, 32>}, {pipeline_mode = #tpu.pipeline_mode<synchronous>, transform_indices = @transform_5, window_bounds = array<i64: 32, 128>}, {pipeline_mode = #tpu.pipeline_mode<synchronous>, transform_indices = @transform_6, window_bounds = array<i64: 1, 128>}, {pipeline_mode = #tpu.pipeline_mode<synchronous>, transform_indices = @transform_7, window_bounds = array<i64: 128, 32>}, {pipeline_mode = #tpu.pipeline_mode<synchronous>, transform_indices = @transform_8, window_bounds = array<i64: 1, 32>}, {pipeline_mode = #tpu.pipeline_mode<synchronous>, transform_indices = @transform_9, window_bounds = array<i64: 1, 32>}, {pipeline_mode = #tpu.pipeline_mode<synchronous>, transform_indices = @transform_10, window_bounds = array<i64: 1, 1>}, {transform_indices = @transform_11, window_bounds = array<i64: 1, 16>}]} {
    %c0 = arith.constant 0 : index
    %c0_0 = arith.constant 0 : index
    %0 = vector.load %arg1[%c0, %c0_0] : memref<16x32xf32, #tpu.memory_space<vmem>>, vector<16x32xf32>
    %1 = arith.truncf %0 : vector<16x32xf32> to vector<16x32xbf16>
    %c0_1 = arith.constant 0 : index
    %c0_2 = arith.constant 0 : index
    %2 = vector.load %arg2[%c0_1, %c0_2] : memref<32x128xbf16, #tpu.memory_space<vmem>>, vector<32x128xbf16>
    %cst = arith.constant dense<0.000000e+00> : vector<16x128xf32>
    %3 = tpu.matmul %1, %2, %cst {dimension_numbers = #tpu.dot_dimension_numbers<[1], [0], [0], [1], [0, 0, 1, 1], [], []>} : vector<16x32xbf16>, vector<32x128xbf16>, vector<16x128xf32> -> vector<16x128xf32>
    %c0_3 = arith.constant 0 : index
    %c0_4 = arith.constant 0 : index
    %4 = vector.load %arg3[%c0_3, %c0_4] : memref<1x128xf32, #tpu.memory_space<vmem>>, vector<1x128xf32>
    %5 = vector.broadcast %4 : vector<1x128xf32> to vector<16x128xf32>
    %6 = arith.addf %3, %5 : vector<16x128xf32>
    %cst_5 = arith.constant 5.000000e-01 : f32
    %7 = vector.broadcast %cst_5 : f32 to vector<16x128xf32>
    %8 = arith.mulf %7, %6 : vector<16x128xf32>
    %cst_6 = arith.constant 4.471500e-02 : f32
    %9 = vector.broadcast %cst_6 : f32 to vector<16x128xf32>
    %10 = arith.mulf %9, %6 : vector<16x128xf32>
    %11 = arith.mulf %10, %6 : vector<16x128xf32>
    %12 = arith.mulf %11, %6 : vector<16x128xf32>
    %13 = arith.addf %6, %12 : vector<16x128xf32>
    %cst_7 = arith.constant 0.797884583 : f32
    %14 = vector.broadcast %cst_7 : f32 to vector<16x128xf32>
    %15 = arith.mulf %14, %13 : vector<16x128xf32>
    %16 = math.tanh %15 : vector<16x128xf32>
    %cst_8 = arith.constant 1.000000e+00 : f32
    %17 = vector.broadcast %cst_8 : f32 to vector<16x128xf32>
    %18 = arith.addf %17, %16 : vector<16x128xf32>
    %19 = arith.mulf %8, %18 : vector<16x128xf32>
    %20 = arith.truncf %19 : vector<16x128xf32> to vector<16x128xbf16>
    %c0_9 = arith.constant 0 : index
    %c0_10 = arith.constant 0 : index
    %21 = vector.load %arg4[%c0_9, %c0_10] : memref<128x32xbf16, #tpu.memory_space<vmem>>, vector<128x32xbf16>
    %cst_11 = arith.constant dense<0.000000e+00> : vector<16x32xf32>
    %22 = tpu.matmul %20, %21, %cst_11 {dimension_numbers = #tpu.dot_dimension_numbers<[1], [0], [0], [1], [0, 0, 1, 1], [], []>} : vector<16x128xbf16>, vector<128x32xbf16>, vector<16x32xf32> -> vector<16x32xf32>
    %23 = arith.addf %0, %22 : vector<16x32xf32>
    %c0_12 = arith.constant 0 : index
    %c0_13 = arith.constant 0 : index
    %24 = vector.load %arg5[%c0_12, %c0_13] : memref<1x32xf32, #tpu.memory_space<vmem>>, vector<1x32xf32>
    %25 = vector.broadcast %24 : vector<1x32xf32> to vector<16x32xf32>
    %26 = arith.addf %23, %25 : vector<16x32xf32>
    %27 = arith.truncf %26 : vector<16x32xf32> to vector<16x32xbf16>
    %c0_14 = arith.constant 0 : index
    %c0_15 = arith.constant 0 : index
    %28 = vector.load %arg6[%c0_14, %c0_15] : memref<32x128xbf16, #tpu.memory_space<vmem>>, vector<32x128xbf16>
    %cst_16 = arith.constant dense<0.000000e+00> : vector<16x128xf32>
    %29 = tpu.matmul %27, %28, %cst_16 {dimension_numbers = #tpu.dot_dimension_numbers<[1], [0], [0], [1], [0, 0, 1, 1], [], []>} : vector<16x32xbf16>, vector<32x128xbf16>, vector<16x128xf32> -> vector<16x128xf32>
    %c0_17 = arith.constant 0 : index
    %c0_18 = arith.constant 0 : index
    %30 = vector.load %arg7[%c0_17, %c0_18] : memref<1x128xf32, #tpu.memory_space<vmem>>, vector<1x128xf32>
    %31 = vector.broadcast %30 : vector<1x128xf32> to vector<16x128xf32>
    %32 = arith.addf %29, %31 : vector<16x128xf32>
    %cst_19 = arith.constant 5.000000e-01 : f32
    %33 = vector.broadcast %cst_19 : f32 to vector<16x128xf32>
    %34 = arith.mulf %33, %32 : vector<16x128xf32>
    %cst_20 = arith.constant 4.471500e-02 : f32
    %35 = vector.broadcast %cst_20 : f32 to vector<16x128xf32>
    %36 = arith.mulf %35, %32 : vector<16x128xf32>
    %37 = arith.mulf %36, %32 : vector<16x128xf32>
    %38 = arith.mulf %37, %32 : vector<16x128xf32>
    %39 = arith.addf %32, %38 : vector<16x128xf32>
    %cst_21 = arith.constant 0.797884583 : f32
    %40 = vector.broadcast %cst_21 : f32 to vector<16x128xf32>
    %41 = arith.mulf %40, %39 : vector<16x128xf32>
    %42 = math.tanh %41 : vector<16x128xf32>
    %cst_22 = arith.constant 1.000000e+00 : f32
    %43 = vector.broadcast %cst_22 : f32 to vector<16x128xf32>
    %44 = arith.addf %43, %42 : vector<16x128xf32>
    %45 = arith.mulf %34, %44 : vector<16x128xf32>
    %46 = arith.truncf %45 : vector<16x128xf32> to vector<16x128xbf16>
    %c0_23 = arith.constant 0 : index
    %c0_24 = arith.constant 0 : index
    %47 = vector.load %arg8[%c0_23, %c0_24] : memref<128x32xbf16, #tpu.memory_space<vmem>>, vector<128x32xbf16>
    %cst_25 = arith.constant dense<0.000000e+00> : vector<16x32xf32>
    %48 = tpu.matmul %46, %47, %cst_25 {dimension_numbers = #tpu.dot_dimension_numbers<[1], [0], [0], [1], [0, 0, 1, 1], [], []>} : vector<16x128xbf16>, vector<128x32xbf16>, vector<16x32xf32> -> vector<16x32xf32>
    %49 = arith.addf %26, %48 : vector<16x32xf32>
    %c0_26 = arith.constant 0 : index
    %c0_27 = arith.constant 0 : index
    %50 = vector.load %arg9[%c0_26, %c0_27] : memref<1x32xf32, #tpu.memory_space<vmem>>, vector<1x32xf32>
    %51 = vector.broadcast %50 : vector<1x32xf32> to vector<16x32xf32>
    %52 = arith.addf %49, %51 : vector<16x32xf32>
    %c0_28 = arith.constant 0 : index
    %c0_29 = arith.constant 0 : index
    %53 = vector.load %arg10[%c0_28, %c0_29] : memref<1x32xbf16, #tpu.memory_space<vmem>>, vector<1x32xbf16>
    %54 = arith.truncf %52 : vector<16x32xf32> to vector<16x32xbf16>
    %cst_30 = arith.constant dense<0.000000e+00> : vector<1x16xf32>
    %55 = tpu.matmul %53, %54, %cst_30 {dimension_numbers = #tpu.dot_dimension_numbers<[1], [1], [0], [0], [0, 0, 1, 0], [], []>} : vector<1x32xbf16>, vector<16x32xbf16>, vector<1x16xf32> -> vector<1x16xf32>
    %c0_31 = arith.constant 0 : index
    %c0_32 = arith.constant 0 : index
    %56 = vector.load %arg11[%c0_31, %c0_32] : memref<1x1xf32, #tpu.memory_space<vmem>>, vector<1x1xf32>
    %57 = vector.broadcast %56 : vector<1x1xf32> to vector<1x16xf32>
    %58 = arith.addf %55, %57 : vector<1x16xf32>
    %c0_33 = arith.constant 0 : index
    %c0_34 = arith.constant 0 : index
    %59 = vector.load %arg12[%c0_33, %c0_34] : memref<1x16xf32, #tpu.memory_space<vmem>>, vector<1x16xf32>
    tpu.vector_store %arg12[%c0_33, %c0_34], %58 {strides = array<i32>} : memref<1x16xf32, #tpu.memory_space<vmem>>, vector<1x16xf32>,
    return
  }
  func.func @transform_0(%arg0: i32) -> (i32, i32) {
    %c0_i32 = arith.constant 0 : i32
    %c0_i32_0 = arith.constant 0 : i32
    return %arg0, %c0_i32 : i32, i32
  }
  func.func @transform_1(%arg0: i32) -> (i32, i32) {
    %c0_i32 = arith.constant 0 : i32
    %c0_i32_0 = arith.constant 0 : i32
    %c0_i32_1 = arith.constant 0 : i32
    return %c0_i32, %c0_i32_0 : i32, i32
  }
  func.func @transform_2(%arg0: i32) -> (i32, i32) {
    %c0_i32 = arith.constant 0 : i32
    %c0_i32_0 = arith.constant 0 : i32
    %c0_i32_1 = arith.constant 0 : i32
    return %c0_i32, %c0_i32_0 : i32, i32
  }
  func.func @transform_3(%arg0: i32) -> (i32, i32) {
    %c0_i32 = arith.constant 0 : i32
    %c0_i32_0 = arith.constant 0 : i32
    %c0_i32_1 = arith.constant 0 : i32
    return %c0_i32, %c0_i32_0 : i32, i32
  }
  func.func @transform_4(%arg0: i32) -> (i32, i32) {
    %c0_i32 = arith.constant 0 : i32
    %c0_i32_0 = arith.constant 0 : i32
    %c0_i32_1 = arith.constant 0 : i32
    return %c0_i32, %c0_i32_0 : i32, i32
  }
  func.func @transform_5(%arg0: i32) -> (i32, i32) {
    %c0_i32 = arith.constant 0 : i32
    %c0_i32_0 = arith.constant 0 : i32
    %c0_i32_1 = arith.constant 0 : i32
    return %c0_i32, %c0_i32_0 : i32, i32
  }
  func.func @transform_6(%arg0: i32) -> (i32, i32) {
    %c0_i32 = arith.constant 0 : i32
    %c0_i32_0 = arith.constant 0 : i32
    %c0_i32_1 = arith.constant 0 : i32
    return %c0_i32, %c0_i32_0 : i32, i32
  }
  func.func @transform_7(%arg0: i32) -> (i32, i32) {
    %c0_i32 = arith.constant 0 : i32
    %c0_i32_0 = arith.constant 0 : i32
    %c0_i32_1 = arith.constant 0 : i32
    return %c0_i32, %c0_i32_0 : i32, i32
  }
  func.func @transform_8(%arg0: i32) -> (i32, i32) {
    %c0_i32 = arith.constant 0 : i32
    %c0_i32_0 = arith.constant 0 : i32
    %c0_i32_1 = arith.constant 0 : i32
    return %c0_i32, %c0_i32_0 : i32, i32
  }
  func.func @transform_9(%arg0: i32) -> (i32, i32) {
    %c0_i32 = arith.constant 0 : i32
    %c0_i32_0 = arith.constant 0 : i32
    %c0_i32_1 = arith.constant 0 : i32
    return %c0_i32, %c0_i32_0 : i32, i32
  }
  func.func @transform_10(%arg0: i32) -> (i32, i32) {
    %c0_i32 = arith.constant 0 : i32
    %c0_i32_0 = arith.constant 0 : i32
    %c0_i32_1 = arith.constant 0 : i32
    return %c0_i32, %c0_i32_0 : i32, i32
  }
  func.func @transform_11(%arg0: i32) -> (i32, i32) {
    %c0_i32 = arith.constant 0 : i32
    %c0_i32_0 = arith.constant 0 : i32
    return %c0_i32, %arg0 : i32, i32
  }
}

</mosaic_0001>

<bundles_post_ra>
// kernel: squeeze.1
= control target key start
LH: loop header
LB: loop body
LE: loop exit
PB: predicated region body
PF: predicated region fallthrough
CT: control target
= control target key end

     0   :  { %s77_s0 = inlined_call_operand.vmem [shape: f32[16], index: 0, kind: input, shape index: {}]   ;;  %s78_s1 = inlined_call_operand.hbm [shape: f32[2,8], index: 1, kind: output, shape index: {}]  }
   0x1   :  { %v6_v0 = vld [vmem:[%s77_s0] sm:$0x1] }
   0x2   :  { %2 = vsyncpa [#allocation1], 0  ;;  %7 = vst [vmem:[#allocation3] sm:$0x1] %v6_v0  ;;  %vm9_vm0 = vcmask 64512   ;;  %s59_s0 = smov 120  }
   0x3   :  { %s60_s8 = smov [#allocation0]  }
   0x4   :  { %s29_s9 = sshll.u32 %s60_s8, 4  ;;  %s30_s9 = int_to_ptr.vmem [resolvable:$true] %s29_s9 }
   0x5   :  { %s37_s10 = scalar_lea.vmem %s30_s9, 32  ;;  %p42_p1 = scmp.lt.s32.totalorder %s30_s9, %s30_s9 }
   0x6   :  { %p38_p0 = scmp.ne.s32.totalorder %s30_s9, %s37_s10  ;;  %p43_p2 = scmp.lt.s32.totalorder %s37_s10, %s37_s10 }
   0x8   :  { %p44_p3 = por %p43_p2, %p42_p1 }
   0x9   :  { %v11_v1 = vld [vmem:[#allocation3] sm:$0x1]  }
   0xa   :  { %v8_v2 = vld [vmem:[#allocation3] sm:$0x1]   ;;  %12 = vrot.lane.b32.xlu0 %v11_v1, %s59_s0  ;;  %p45_p4 = pnand %p44_p3, %p38_p0 }
   0xb   :  { %10 = vst.msk [vmem:[#allocation2] sm:$0x1] %vm9_vm0, %v8_v2  }
  0x7c   :  { %v13_v3 = vpop.permute.xlu0 %12  }
  0x7d   :  { %16 = vst.msk [vmem:[#allocation2 + $0x1] sm:$0x1] %vm9_vm0, %v13_v3  }
  0x84   :  { %v21_v4 = vld [vmem:[#allocation2] sm:$0x3] }
  0x85   :  { %24 = vst [vmem:[#allocation0] sm:$0x3] %v21_v4 }
  0x86   :  { %48 = shalt.err (!%p45_p4)
}
  0x87   :  { %32 = dma.vmem_to_hbm [thread:$0]  %s30_s9, 32, %s78_s1, [#allocation1]  }
  0x88   :  { %57 = dma.done.wait [#allocation1], 32  }
  0x89   :  { %58 = vsyncadd [#allocation1], 4294967264 }
  0x8a   :  { %34 = vsyncpa [#allocation1], 1 }

// kernel: residual_logistic_regressor_logits.1
= control target key start
LH: loop header
LB: loop body
LE: loop exit
PB: predicated region body
PF: predicated region fallthrough
CT: control target
= control target key end

     0   :  { %v661_v0 = vmov 0.0   ;;  %vm662_vm0 = vmmov 0   ;;  %vm67_vm1 = vcmask 261120   ;;  %vm508_vm2 = vcmask 122880   ;;  %s862_s1 = inlined_call_operand.vmem [shape: bf16[32,128], index: 1, kind: input, shape index: {}]   ;;  %s863_s0 = inlined_call_operand.vmem [shape: f32[16,32], index: 0, kind: input, shape index: {}]   ;;  %s864_s3 = inlined_call_operand.vmem [shape: bf16[128,32], index: 3, kind: input, shape index: {}]   ;;  %s865_s2 = inlined_call_operand.vmem [shape: f32[1,128], index: 2, kind: input, shape index: {}]   ;;  %s866_s5 = inlined_call_operand.vmem [shape: bf16[32,128], index: 5, kind: input, shape index: {}]   ;;  %s867_s4 = inlined_call_operand.vmem [shape: f32[1,32], index: 4, kind: input, shape index: {}]   ;;  %s868_s7 = inlined_call_operand.vmem [shape: bf16[128,32], index: 7, kind: input, shape index: {}]   ;;  %s869_s6 = inlined_call_operand.vmem [shape: f32[1,128], index: 6, kind: input, shape index: {}]   ;;  %s870_s10 = inlined_call_operand.<no memory space> [shape: f32[1,1], index: 10, kind: input, shape index: {}]   ;;  %s871_s8 = inlined_call_operand.vmem [shape: f32[1,32], index: 8, kind: input, shape index: {}]   ;;  %s872_s9 = inlined_call_operand.vmem [shape: bf16[1,32], index: 9, kind: input, shape index: {}]   ;;  %s873_s11 = inlined_call_operand.vmem [shape: f32[1,16], index: 11, kind: output, shape index: {}]  }
   0x1   :  { %567 = vmatprep.subr.bf16.mxu0 %v661_v0  ;;  %v633_v1 = vld [vmem:[%s862_s1 + $0x8] sm:$0xff]   ;;  %571 = vmatprep.mubr.msk.bf16.mxu0 %vm662_vm0, %v661_v0  ;;  %v634_v2 = vld [vmem:[%s862_s1] sm:$0xff]   ;;  %v635_v6 = vld [vmem:[%s864_s3 + $0x38] sm:$0xff]  }
   0x2   :  { %575 = vmatprep.subr.bf16.mxu1 %v661_v0  ;;  %591 = vmatprep.mubr.msk.bf16.mxu1 %vm662_vm0, %v661_v0  ;;  %v739_v3 = vld [vmem:[%s863_s0] sm:$0xff]  ;;  %v744_v4 = vld [vmem:[%s863_s0 + $0x8] sm:$0xff]  ;;  %v636_v7 = vld [vmem:[%s864_s3 + $0x30] sm:$0xff]  }
   0x3   :  { %568 = vmatpush3.bf16.msra.mxu0 %v633_v1  ;;  %v43_v5 = vpack.c.bf16 %v744_v4, %v739_v3  ;;  %576 = vmatpush3.bf16.msra.mxu1 %v635_v6  ;;  %v637_v8 = vld [vmem:[%s864_s3 + $0x28] sm:$0xff]   ;;  %v638_v9 = vld [vmem:[%s864_s3 + $0x20] sm:$0xff]   ;;  %v639_v10 = vld [vmem:[%s864_s3 + $0x18] sm:$0xff]  }
   0x4   :  { %569 = vmatprep.subr.bf16.mxu0 %v661_v0  ;;  %577 = vmatprep.subr.bf16.mxu1 %v661_v0  ;;  %v640_v11 = vld [vmem:[%s864_s3 + $0x10] sm:$0xff]   ;;  %v641_v12 = vld [vmem:[%s864_s3 + $0x8] sm:$0xff]   ;;  %v642_v13 = vld [vmem:[%s864_s3] sm:$0xff]  }
   0x5   :  { %v514_v14 = vld [vmem:[%s865_s2] ss:$0 sm:$0xff]  ;;  %v643_v40 = vld [vmem:[%s866_s5 + $0x8] sm:$0xff]   ;;  %v645_v52 = vld [vmem:[%s868_s7 + $0x38] sm:$0xff]  }
   0x6   :  { %v644_v41 = vld [vmem:[%s866_s5] sm:$0xff]   ;;  %v646_v53 = vld [vmem:[%s868_s7 + $0x30] sm:$0xff]   ;;  %v647_v54 = vld [vmem:[%s868_s7 + $0x28] sm:$0xff]  }
   0x7   :  { %570 = vmatpush3.bf16.msra.mxu0 %v634_v2  ;;  %578 = vmatpush3.bf16.msra.mxu1 %v636_v7  ;;  %v526_v45 = vld [vmem:[%s867_s4] ss:$0 sm:$0xff]  ;;  %v649_v56 = vld [vmem:[%s868_s7 + $0x18] sm:$0xff]   ;;  %v650_v57 = vld [vmem:[%s868_s7 + $0x10] sm:$0xff]  }
   0x8   :  { %595 = vmatprep.subr.bf16.mxu0 %v661_v0  ;;  %579 = vmatprep.subr.bf16.mxu1 %v661_v0  ;;  %v648_v55 = vld [vmem:[%s868_s7 + $0x20] sm:$0xff]   ;;  %v651_v58 = vld [vmem:[%s868_s7 + $0x8] sm:$0xff]  }
   0x9   :  { %v652_v59 = vld [vmem:[%s868_s7] sm:$0xff]  }
   0xa   :  { %572 = vmatmul.mubr.msk.bf16.vlgmr.msra.gmra.mxu0 %vm67_vm1, %v43_v5  ;;  %v527_v60 = vld [vmem:[%s869_s6] ss:$0 sm:$0xff] }
   0xb   :  { %599 = vmatprep.mubr.msk.bf16.mxu0 %vm662_vm0, %v661_v0  ;;  %580 = vmatpush3.bf16.msra.mxu1 %v637_v8 }
   0xc   :  { %581 = vmatprep.subr.bf16.mxu1 %v661_v0  ;;  %596 = vmatpush3.bf16.msra.mxu0 %v643_v40 }
   0xd   :  { %597 = vmatprep.subr.bf16.mxu0 %v661_v0 }
   0xf   :  { %582 = vmatpush3.bf16.msra.mxu1 %v638_v9 }
  0x10   :  { %583 = vmatprep.subr.bf16.mxu1 %v661_v0  ;;  %598 = vmatpush3.bf16.msra.mxu0 %v644_v41 }
  0x11   :  { %603 = vmatprep.subr.bf16.mxu0 %v661_v0 }
  0x13   :  { %584 = vmatpush3.bf16.msra.mxu1 %v639_v10 }
  0x14   :  { %585 = vmatprep.subr.bf16.mxu1 %v661_v0 }
  0x17   :  { %586 = vmatpush3.bf16.msra.mxu1 %v640_v11 }
  0x18   :  { %587 = vmatprep.subr.bf16.mxu1 %v661_v0 }
  0x1b   :  { %588 = vmatpush3.bf16.msra.mxu1 %v641_v12 }
  0x1c   :  { %589 = vmatprep.subr.bf16.mxu1 %v661_v0 }
  0x1f   :  { %590 = vmatpush3.bf16.msra.mxu1 %v642_v13 }
  0x20   :  { %623 = vmatprep.subr.bf16.mxu1 %v661_v0 }
  0xca   :  { %v105_v15 = vpop.f32.mrf.mxu0 }
  0xcb   :  { %v106_v16 = vadd.f32 %v514_v14, %v105_v15 }
  0xcc   :  { %v573_v17 = vpop.f32.mrf.mxu0 }
  0xcd   :  { %v114_v18 = vmul.f32 0.044715, %v106_v16  ;;  %v112_v34 = vmul.f32 0.5, %v106_v16 }
  0xce   :  { %v108_v19 = vpop.f32.mrf.mxu0 }
  0xcf   :  { %v116_v20 = vmul.f32 %v114_v18, %v106_v16  ;;  %v109_v21 = vadd.f32 %v514_v14, %v108_v19 }
  0xd0   :  { %v574_v22 = vpop.f32.mrf.mxu0 }
  0xd1   :  { %v118_v23 = vmul.f32 %v116_v20, %v106_v16  ;;  %v115_v24 = vmul.f32 0.044715, %v109_v21  ;;  %v113_v35 = vmul.f32 0.5, %v109_v21  ;;  %v663_v22 = vmov 0  }
  0xd2   :  { %632 = vset.pattern.permute.xlu0 %v663_v22 }
  0xd3   :  { %v117_v25 = vmul.f32 %v115_v24, %v109_v21  ;;  %v120_v26 = vadd.f32 %v118_v23, %v106_v16  ;;  %v16_v23 = vstv %s870_s10 }
  0xd4   :  { %17 = vst [vmem:[#allocation2] sm:$0x1] %v16_v23 }
  0xd5   :  { %v119_v27 = vmul.f32 %v117_v25, %v109_v21  ;;  %v122_v28 = vmul.f32 0.7978846, %v120_v26 }
  0xd7   :  { %v121_v29 = vadd.f32 %v119_v27, %v109_v21  ;;  %653 = vtanh.f32 %v122_v28  ;;  %v539_v28 = vld [vmem:[%s871_s8] ss:$0 sm:$0xff] }
  0xd9   :  { %v123_v30 = vmul.f32 0.7978846, %v121_v29 }
  0xdb   :  { %655 = vtanh.f32 %v123_v30  ;;  %v452_v24 = vld [vmem:[#allocation2] sm:$0x1] }
  0xdc   :  { %455 = vperm.xlu0 %632, %v452_v24  }
  0xe4   :  { %v654_v31 = vpop.eup %653 }
  0xe5   :  { %v126_v32 = vadd.f32 1.0, %v654_v31 }
  0xe7   :  { %v128_v37 = vmul.f32 %v126_v32, %v112_v34 }
  0xe8   :  { %v656_v33 = vpop.eup %655 }
  0xe9   :  { %v127_v36 = vadd.f32 1.0, %v656_v33 }
  0xeb   :  { %v129_v38 = vmul.f32 %v127_v36, %v113_v35  ;;  %v450_v36 = vld [vmem:[%s872_s9] sm:$0x1] }
  0xed   :  { %v130_v39 = vpack.c.bf16 %v129_v38, %v128_v37  ;;  %v458_v37 = vlaneseq }
  0xef   :  { %592 = vmatmul.mubr.bf16.vlgmr.msra.gmra.mxu1 %v130_v39  ;;  %v459_v38 = vshrl.u32 %v458_v37, 7 }
  0xf0   :  { %625 = vmatprep.mubr.msk.bf16.mxu1 %vm662_vm0, %v661_v0 }
  0xf1   :  { %v460_v39 = vsub.s32 0, %v459_v38 }
 0x157   :  { %v456_v40 = vpop.permute.xlu0 %455 }
 0x158   :  { %v461_v41 = vrot.slane %v456_v40, %v460_v39 }
 0x1af   :  { %v229_v42 = vpop.f32.mrf.mxu1 }
 0x1b0   :  { %v236_v44 = vadd.f32 %v229_v42, %v739_v3 }
 0x1b1   :  { %v593_v43 = vpop.f32.mrf.mxu1 }
 0x1b2   :  { %v803_v49 = vadd.f32 %v526_v45, %v236_v44 }
 0x1b3   :  { %v232_v46 = vpop.f32.mrf.mxu1 }
 0x1b4   :  { %v237_v47 = vadd.f32 %v232_v46, %v744_v4 }
 0x1b5   :  { %v594_v48 = vpop.f32.mrf.mxu1 }
 0x1b6   :  { %v805_v50 = vadd.f32 %v526_v45, %v237_v47 }
 0x1b8   :  { %v247_v51 = vpack.c.bf16 %v805_v50, %v803_v49 }
 0x1ba   :  { %600 = vmatmul.mubr.msk.bf16.vlgmr.msra.gmra.mxu0 %vm67_vm1, %v247_v51 }
 0x1bb   :  { %619 = vmatprep.mubr.msk.bf16.mxu0 %vm662_vm0, %v661_v0  ;;  %604 = vmatpush3.bf16.msra.mxu0 %v645_v52 }
 0x1bc   :  { %605 = vmatprep.subr.bf16.mxu0 %v661_v0 }
 0x1bf   :  { %606 = vmatpush3.bf16.msra.mxu0 %v646_v53 }
 0x1c0   :  { %607 = vmatprep.subr.bf16.mxu0 %v661_v0 }
 0x1c3   :  { %608 = vmatpush3.bf16.msra.mxu0 %v647_v54 }
 0x1c4   :  { %609 = vmatprep.subr.bf16.mxu0 %v661_v0 }
 0x1c7   :  { %610 = vmatpush3.bf16.msra.mxu0 %v648_v55 }
 0x1c8   :  { %611 = vmatprep.subr.bf16.mxu0 %v661_v0 }
 0x1cb   :  { %612 = vmatpush3.bf16.msra.mxu0 %v649_v56 }
 0x1cc   :  { %613 = vmatprep.subr.bf16.mxu0 %v661_v0 }
 0x1cf   :  { %614 = vmatpush3.bf16.msra.mxu0 %v650_v57 }
 0x1d0   :  { %615 = vmatprep.subr.bf16.mxu0 %v661_v0 }
 0x1d3   :  { %616 = vmatpush3.bf16.msra.mxu0 %v651_v58 }
 0x1d4   :  { %617 = vmatprep.subr.bf16.mxu0 %v661_v0 }
 0x1d7   :  { %618 = vmatpush3.bf16.msra.mxu0 %v652_v59 }
 0x27a   :  { %v308_v61 = vpop.f32.mrf.mxu0 }
 0x27b   :  { %v309_v62 = vadd.f32 %v527_v60, %v308_v61 }
 0x27c   :  { %v601_v63 = vpop.f32.mrf.mxu0 }
 0x27d   :  { %v317_v1 = vmul.f32 0.044715, %v309_v62  ;;  %v315_v16 = vmul.f32 0.5, %v309_v62 }
 0x27e   :  { %v311_v2 = vpop.f32.mrf.mxu0 }
 0x27f   :  { %v319_v3 = vmul.f32 %v317_v1, %v309_v62  ;;  %v312_v4 = vadd.f32 %v527_v60, %v311_v2 }
 0x280   :  { %v602_v5 = vpop.f32.mrf.mxu0 }
 0x281   :  { %v321_v6 = vmul.f32 %v319_v3, %v309_v62  ;;  %v318_v7 = vmul.f32 0.044715, %v312_v4  ;;  %v316_v17 = vmul.f32 0.5, %v312_v4 }
 0x283   :  { %v323_v8 = vadd.f32 %v321_v6, %v309_v62  ;;  %v320_v9 = vmul.f32 %v318_v7, %v312_v4 }
 0x285   :  { %v325_v10 = vmul.f32 0.7978846, %v323_v8  ;;  %v322_v11 = vmul.f32 %v320_v9, %v312_v4 }
 0x287   :  { %657 = vtanh.f32 %v325_v10  ;;  %v324_v0 = vadd.f32 %v322_v11, %v312_v4 }
 0x289   :  { %v326_v12 = vmul.f32 0.7978846, %v324_v0 }
 0x28b   :  { %659 = vtanh.f32 %v326_v12 }
 0x294   :  { %v658_v13 = vpop.eup %657 }
 0x295   :  { %v329_v14 = vadd.f32 1.0, %v658_v13 }
 0x297   :  { %v331_v19 = vmul.f32 %v329_v14, %v315_v16 }
 0x298   :  { %v660_v15 = vpop.eup %659 }
 0x299   :  { %v330_v18 = vadd.f32 1.0, %v660_v15 }
 0x29b   :  { %v332_v20 = vmul.f32 %v330_v18, %v316_v17 }
 0x29d   :  { %v333_v21 = vpack.c.bf16 %v332_v20, %v331_v19 }
 0x29f   :  { %620 = vmatmul.mubr.bf16.vlgmr.msra.gmra.mxu0 %v333_v21 }
 0x35f   :  { %v432_v25 = vpop.f32.mrf.mxu0 }
 0x360   :  { %v439_v27 = vadd.f32 %v432_v25, %v803_v49 }
 0x361   :  { %v621_v26 = vpop.f32.mrf.mxu0 }
 0x362   :  { %v448_v32 = vadd.f32 %v539_v28, %v439_v27 }
 0x363   :  { %v435_v29 = vpop.f32.mrf.mxu0 }
 0x364   :  { %v440_v30 = vadd.f32 %v435_v29, %v805_v50 }
 0x365   :  { %v622_v31 = vpop.f32.mrf.mxu0 }
 0x366   :  { %v449_v33 = vadd.f32 %v539_v28, %v440_v30 }
 0x368   :  { %v451_v34 = vpack.c.bf16 %v449_v33, %v448_v32 }
 0x36a   :  { %v466_v35 = vsel %vm67_vm1, %v451_v34, 0 }
 0x36b   :  { %624 = vmatpush3.bf16.xpose.msra.mxu1 %v466_v35 }
 0x372   :  { %626 = vmatmul.mubr.msk.bf16.vlgmr.msra.gmra.mxu1 %vm67_vm1, %v450_v36 }
 0x432   :  { %v502_v42 = vpop.f32.mrf.mxu1 }
 0x433   :  { %v503_v43 = vadd.f32 %v502_v42, %v461_v41 }
 0x434   :  { %v627_v44 = vpop.f32.mrf.mxu1 }
 0x435   :  { %509 = vst.msk [vmem:[%s873_s11] sm:$0x1] %vm508_vm2, %v503_v43 }
 0x436   :  { %v505_v45 = vpop.f32.mrf.mxu1 }
 0x438   :  { %v628_v46 = vpop.f32.mrf.mxu1 }

</bundles_post_ra>
